<compile_context>
chip_gen: v6e
topology: v6e:2x2x1
jax: 0.10.0
libtpu: 0.0.40
codegen_flags: <defaults>
</compile_context>

<pallas_src>
import jax
import jax.numpy as jnp
from jax.experimental import pallas as pl
from jax.experimental.pallas import tpu as pltpu


def _round_up(v, m):
    return ((v + m - 1) // m) * m


def _deinterleave_affine_kernel(x2_ref, m_ref, b_ref, o_ref):
    # x2_ref: (rb, 256) lane-dense interleaved inputs (128 batch rows / row).
    # m_ref : (256, 128) resident de-interleave + weight matrix.
    # b_ref : (1,) collapsed bias, SMEM scalar.
    # o_ref : (rb, 128) lane-dense outputs (batch on lanes).
    y = jnp.dot(
        x2_ref[...],
        m_ref[...],
        preferred_element_type=jnp.float32,
        precision=jax.lax.Precision.HIGHEST,
    )
    o_ref[...] = (y + b_ref[0]).astype(o_ref.dtype)


def circle_model_v1(x, params, *, block_rows=1024, min_kernel_batch=4096):
    """Forward pass of CircleModelV1: layer_3(layer_2(layer_1(x)))."""
    w1, b1, w2, b2, w3, b3 = params

    # Exact affine collapse (plain XLA ops, done once).
    wc = (w1 @ w2 @ w3).astype(jnp.float32)               # (2, 1)
    bc = ((b1 @ w2 + b2) @ w3 + b3).astype(jnp.float32)   # (1, 1)

    xf = x.astype(jnp.float32)
    batch = xf.shape[0]

    # Tiny batches: fixed pallas_call / DMA-setup overhead dominates; a fused
    # XLA affine is already at roofline there.
    if batch < min_kernel_batch:
        return xf @ wc + bc

    # ---- Pallas path: lane-dense de-interleaving matmul over big tiles. ----
    bp = _round_up(batch, 128)
    if bp != batch:
        # <128 padded rows; their (garbage) outputs are sliced off below.
        xf = jnp.pad(xf, ((0, bp - batch), (0, 0)))
    rows = bp // 128                       # rows of the (rows, 256) view
    x2 = xf.reshape(rows, 256)             # free, contiguous reshape

    # De-interleave + weight matrix: M[2j, j] = wc0, M[2j+1, j] = wc1.
    eye = jnp.eye(128, dtype=jnp.float32)
    m = jnp.stack([eye * wc[0, 0], eye * wc[1, 0]], axis=1).reshape(256, 128)
    b_smem = bc.reshape(1)                 # (1,) SMEM scalar

    # Big tiles (default 131072 batch rows / step), but keep >= 2 grid steps
    # so both v7x TensorCores are used; row tile must be a multiple of 8.
    rb = min(block_rows, max(8, _round_up(pl.cdiv(rows, 2), 8)))
    grid = (pl.cdiv(rows, rb),)

    out2 = pl.pallas_call(
        _deinterleave_affine_kernel,
        out_shape=jax.ShapeDtypeStruct((rows, 128), jnp.float32),
        grid_spec=pltpu.PrefetchScalarGridSpec(
            num_scalar_prefetch=0,
            grid=grid,
            in_specs=[
                pl.BlockSpec((rb, 256), lambda i: (i, 0)),     # x tile (lane-dense)
                pl.BlockSpec((256, 128), lambda i: (0, 0)),    # M, VMEM-resident
                pl.BlockSpec(memory_space=pltpu.MemorySpace.SMEM),  # bias scalar
            ],
            out_specs=pl.BlockSpec((rb, 128), lambda i: (i, 0)),    # lane-dense out
        ),
        compiler_params=pltpu.CompilerParams(
            dimension_semantics=("parallel",),   # megacore sharding on v7x
        ),
    )(x2, m, b_smem)

    out = out2.reshape(bp, 1)              # free, contiguous reshape
    return out if bp == batch else out[:batch]


def init_params(key):
    """Deterministic init matching nn.Linear shapes.

    PyTorch nn.Linear(in, out) uses U(-1/sqrt(in), 1/sqrt(in)) for both
    weight (out, in) and bias (out,). We sample in (out, in) layout and
    transpose to (in, out) for the x @ W convention used here.
    """
    def linear(k, fan_in, fan_out):
        kw, kb = jax.random.split(k)
        bound = 1.0 / jnp.sqrt(jnp.float32(fan_in))
        w_pt = jax.random.uniform(kw, (fan_out, fan_in), jnp.float32, -bound, bound)
        b = jax.random.uniform(kb, (1, fan_out), jnp.float32, -bound, bound)
        return w_pt.T, b  # (in, out), (1, out)

    k1, k2, k3 = jax.random.split(key, 3)
    w1, b1 = linear(k1, 2, 10)
    w2, b2 = linear(k2, 10, 10)
    w3, b3 = linear(k3, 10, 1)
    return (w1, b1, w2, b2, w3, b3)


def circle_model_v1_ref(x, params):
    """Pure-JAX reference (un-collapsed, layer by layer)."""
    w1, b1, w2, b2, w3, b3 = params
    h1 = x @ w1 + b1
    h2 = h1 @ w2 + b2
    return h2 @ w3 + b3


if __name__ == "__main__":
    key = jax.random.PRNGKey(0)
    kx1, kx2, kx3, kp = jax.random.split(key, 4)
    params = init_params(kp)

    # 1) Tiny batch -> plain-XLA fallback path.
    x_small = jax.random.normal(kx1, (8, 2), jnp.float32)
    out_small = jax.block_until_ready(circle_model_v1(x_small, params))
    ref_small = circle_model_v1_ref(x_small, params)
    assert out_small.shape == (8, 1), out_small.shape
    assert jnp.allclose(out_small, ref_small, atol=1e-5, rtol=1e-5)

    # 2) Kernel path, batch a multiple of 128 (no padding), 2 grid steps.
    x_med = jax.random.normal(kx2, (4096, 2), jnp.float32)
    out_med = jax.block_until_ready(circle_model_v1(x_med, params))
    ref_med = circle_model_v1_ref(x_med, params)
    assert out_med.shape == (4096, 1), out_med.shape
    assert jnp.allclose(out_med, ref_med, atol=1e-5, rtol=1e-5)

    # 3) Kernel path, ragged batch (pad to 128 multiple + ragged last block).
    x_rag = jax.random.normal(kx3, (5000, 2), jnp.float32)
    out_rag = jax.block_until_ready(circle_model_v1(x_rag, params))
    ref_rag = circle_model_v1_ref(x_rag, params)
    assert out_rag.shape == (5000, 1), out_rag.shape
    assert jnp.allclose(out_rag, ref_rag, atol=1e-5, rtol=1e-5)

    print("KERNEL_OK")
</pallas_src>

<mosaic_0001>
module attributes {stable_mosaic.version = 11 : i64} {
  func.func @_deinterleave_affine_kernel(%arg0: i32, %arg1: memref<16x256xf32, #tpu.memory_space<vmem>>, %arg2: memref<256x128xf32, #tpu.memory_space<vmem>>, %arg3: memref<1xf32, #tpu.memory_space<smem>>, %arg4: memref<16x128xf32, #tpu.memory_space<vmem>>) attributes {dimension_semantics = [#tpu.dimension_semantics<parallel>], iteration_bounds = array<i64: 2>, scalar_prefetch = 0 : i64, scratch_operands = 0 : i64, tpu.core_type = #tpu.core_type<tc>, window_params = [{transform_indices = @transform_0, window_bounds = array<i64: 16, 256>}, {pipeline_mode = #tpu.pipeline_mode<synchronous>, transform_indices = @transform_1, window_bounds = array<i64: 256, 128>}, {transform_indices = @transform_2, window_bounds = array<i64: 1>}, {transform_indices = @transform_3, window_bounds = array<i64: 16, 128>}]} {
    %c0 = arith.constant 0 : index
    %c0_0 = arith.constant 0 : index
    %0 = vector.load %arg1[%c0, %c0_0] : memref<16x256xf32, #tpu.memory_space<vmem>>, vector<16x256xf32>
    %c0_1 = arith.constant 0 : index
    %c0_2 = arith.constant 0 : index
    %1 = vector.load %arg2[%c0_1, %c0_2] : memref<256x128xf32, #tpu.memory_space<vmem>>, vector<256x128xf32>
    %cst = arith.constant dense<0.000000e+00> : vector<16x128xf32>
    %2 = tpu.matmul %0, %1, %cst {dimension_numbers = #tpu.dot_dimension_numbers<[1], [0], [0], [1], [0, 0, 1, 1], [], []>, precision = #tpu.contract_precision<fp32>} : vector<16x256xf32>, vector<256x128xf32>, vector<16x128xf32> -> vector<16x128xf32>
    %c0_3 = arith.constant 0 : index
    %3 = memref.load %arg3[%c0_3] : memref<1xf32, #tpu.memory_space<smem>>
    %4 = vector.broadcast %3 : f32 to vector<16x128xf32>
    %5 = arith.addf %2, %4 : vector<16x128xf32>
    %c0_4 = arith.constant 0 : index
    %c0_5 = arith.constant 0 : index
    %6 = vector.load %arg4[%c0_4, %c0_5] : memref<16x128xf32, #tpu.memory_space<vmem>>, vector<16x128xf32>
    tpu.vector_store %arg4[%c0_4, %c0_5], %5 {strides = array<i32>} : memref<16x128xf32, #tpu.memory_space<vmem>>, vector<16x128xf32>,
    return
  }
  func.func @transform_0(%arg0: i32) -> (i32, i32) {
    %c0_i32 = arith.constant 0 : i32
    %c0_i32_0 = arith.constant 0 : i32
    return %arg0, %c0_i32 : i32, i32
  }
  func.func @transform_1(%arg0: i32) -> (i32, i32) {
    %c0_i32 = arith.constant 0 : i32
    %c0_i32_0 = arith.constant 0 : i32
    %c0_i32_1 = arith.constant 0 : i32
    return %c0_i32, %c0_i32_0 : i32, i32
  }
  func.func @transform_2(%arg0: i32) -> i32 {
    %c0_i32 = arith.constant 0 : i32
    %c0_i32_0 = arith.constant 0 : i32
    return %c0_i32 : i32
  }
  func.func @transform_3(%arg0: i32) -> (i32, i32) {
    %c0_i32 = arith.constant 0 : i32
    %c0_i32_0 = arith.constant 0 : i32
    return %arg0, %c0_i32 : i32, i32
  }
}

</mosaic_0001>

<bundles_post_ra>
// kernel: tpu_custom_call.1
= control target key start
LH: loop header
LB: loop body
LE: loop exit
PB: predicated region body
PF: predicated region fallthrough
CT: control target
= control target key end

     0   :  { %s2546_s0 = inlined_call_operand.hbm [shape: f32[32,256], index: 0, kind: input, shape index: {}]   ;;  %s2547_s1 = inlined_call_operand.hbm [shape: f32[256,128], index: 1, kind: input, shape index: {}]   ;;  %s2548_s2 = inlined_call_operand.<no memory space> [shape: f32[1], index: 2, kind: input, shape index: {}]   ;;  %s2549_s3 = inlined_call_operand.hbm [shape: f32[32,128], index: 3, kind: output, shape index: {}]  }
   0x1   :  { %8 = sst [smem:[#allocation2]] %s2548_s2 }
   0x2   :  { %9 = vsyncpa [#allocation4], 0 }
   0x3   :  { %11 = vsyncpa [#allocation4 + $0x1], 0 }
   0x4   :  { %12 = vsyncpa [#allocation7], 0 }
   0x5   :  { %13 = vsyncpa [#allocation5], 0 }
   0x6   :  { %15 = vsyncpa [#allocation5 + $0x1], 0  ;;  %s1730_s14 = smov 0   ;;  %s1732_s15 = smov 0  }
   0x7   :  { %s1734_s16 = smov 0   ;;  %s1736_s17 = smov 0  }
   0x8 LB: > { %s1751_s2 = sadd.s32 4294967295, %s1696_s17   ;;  %s1263_s18 = sadd.s32 4294967294, %s1696_s17   ;;  %s1696_s17 = sphi %s1736_s17, %s2744_s17   ;;  %s1692_s16 = sphi %s1734_s16, %s2743_s16   ;;  %s1688_s15 = sphi %s1732_s15, %s2742_s15   ;;  %s1684_s14 = sphi %s1730_s14, %s2741_s14  }
   0x9   : > { %p41_p0 = scmp.ne.s32.totalorder %s1688_s15, %s1684_s14  ;;  %p2550_p1 = scmp.eq.s32.totalorder %s1751_s2, 0 }
   0xa   : > { %p113_p3 = scmp.eq.s32.totalorder %s1263_s18, 1  ;;  %p1264_p5 = scmp.ge.s32.totalorder %s1696_s17, 1 }
   0xb   : > { %p1760_p4 = por %p2550_p1, %p41_p0  ;;  %p120_p7 = scmp.lt.s32.totalorder %s1696_s17, 3 }
   0xc   : > { %p1765_p6 = por %p113_p3, %p41_p0  ;;  %s1698_s22 = smov [#allocation6]  }
   0xd   : > { %s2626_s19 = scalar_select %p1760_p4, 1, 0 }
   0xe   : > { %s2627_s20 = scalar_select %p1765_p6, 1, 0 }
   0xf   : > { %p1770_p8 = pnand %p1264_p5, %p120_p7  ;;  %s132_s23 = sshll.u32 %s1698_s22, 4  ;;  %s133_s23 = int_to_ptr.vmem [resolvable:$true] %s132_s23 }
  0x10   : > { %s1784_s25 = sadd.s32 1, %s1696_s17   ;;  %s28_s26 = sadd.s32 1, %s1692_s16 }
  0x11   : > { %s2628_s21 = scalar_select %p1770_p8, 1, 0 }
  0x12   : > { %p1519_p9 = pneg %p1770_p8  ;;  %s25_s27 = ssub.s32 %s1696_s17, %s1784_s25 }
  0x13   : > { %s1585_s28 = scalar_lea.vmem %s133_s23, 4096  ;;  %p1593_p5 = scmp.lt.s32.totalorder %s133_s23, %s133_s23 }
  0x14   : > { %p1779_p11 = pnand %p1519_p9, %p2550_p1  ;;  %p1586_p13 = scmp.ne.s32.totalorder %s133_s23, %s1585_s28 }
  0x15   : > { %p1594_p7 = scmp.lt.s32.totalorder %s1585_s28, %s1585_s28 }
  0x16   : > { %p1576_p12 = pneg %p1779_p11 }
  0x17   : > { %p1595_p10 = por %p1594_p7, %p1593_p5 }
  0x18   : > { %p1588_p0 = pnand %p1586_p13, %p1576_p12 }
  0x1a   : > { %p1589_p3 = pneg %p1588_p0 }
  0x1c   : > { %p1596_p2 = pnand %p1595_p10, %p1589_p3 }
  0x1e   : > { %1599 = shalt.err (!%p1596_p2)
}
  0x1f   : > { %s1699_s29 = smov 128   ;;  %s1700_s30 = smov 8  }
  0x20   : > { %1522 = dma.hbm_to_vmem [thread:$0]  (!%p1779_p11), %s2547_s1, 4096, %s133_s23, [#allocation7], %s1699_s29, %s1699_s29, %s1700_s30  }
  0x21   : > { %p26_p9 = scmp.eq.s32.totalorder %s25_s27, 0  ;;  %p35_p12 = scmp.ne.s32.totalorder %s1692_s16, %s1688_s15 }
  0x22   : > { %p36_p10 = scmp.eq.s32.totalorder %s1696_s17, 0  ;;  %p1532_p2 = scmp.lt.s32.totalorder %s1696_s17, 2 }
  0x23   : > { %s1801_s6 = scalar_select %p26_p9, %s1692_s16, %s28_s26  }
  0x24   : > { %p37_p13 = por %p36_p10, %p35_p12  ;;  %p2630_p0 = scmp.eq.s32.totalorder %s1751_s2, 1 }
  0x25   : > { %s149_s8 = sand.u32 1, %s1692_s16   ;;  %s1281_s9 = sshll.u32 %s1696_s17, 9 }
  0x26   : > { %p1805_p3 = por %p2630_p0, %p35_p12  ;;  %s1267_s10 = sshll.u32 %s149_s8, 5 }
  0x27   : > { %s1814_s13 = scalar_lea.hbm %s2546_s0, %s1281_s9  ;;  %s153_s18 = scalar_lea.vmem [#allocation3], %s1267_s10 }
  0x28   : > { %s2631_s7 = scalar_select %p1805_p3, 1, 0 }
  0x29   : > { %s161_s22 = sshll.u32 %s153_s18, 4  ;;  %p1816_p11 = pnand %p1532_p2, %p37_p13  ;;  %s1820_s22 = int_to_ptr.vmem [resolvable:$true] %s161_s22 }
  0x2a   : > { %s1822_s24 = scalar_lea.sflag [#allocation4], %s149_s8  ;;  %s1600_s26 = scalar_lea.hbm %s1814_s13, 512 }
  0x2b   : > { %p1601_p5 = scmp.ne.s32.totalorder %s1814_s13, %s1600_s26  ;;  %p1602_p7 = pneg %p1816_p11 }
  0x2c   : > { %s1605_s29 = scalar_lea.hbm %s2546_s0, 1024  ;;  %p1606_p10 = scmp.lt.s32.totalorder %s1814_s13, %s2546_s0 }
  0x2d   : > { %p1603_p9 = pnand %p1602_p7, %p1601_p5  ;;  %p1607_p2 = scmp.lt.s32.totalorder %s1605_s29, %s1600_s26 }
  0x2f   : > { %p1604_p12 = pneg %p1603_p9  ;;  %p1608_p13 = por %p1607_p2, %p1606_p10 }
  0x31   : > { %p1609_p0 = pnand %p1608_p13, %p1604_p12 }
  0x33   : > { %1612 = shalt.err (!%p1609_p0)
}
  0x34   : > { %s1613_s5 = scalar_lea.vmem %s1820_s22, 512  ;;  %s1701_s8 = smov [#allocation3]  }
  0x35   : > { %p1614_p1 = scmp.ne.s32.totalorder %s1820_s22, %s1613_s5  ;;  %s1618_s9 = sshll.u32 %s1701_s8, 4  ;;  %s1619_s9 = int_to_ptr.vmem [resolvable:$false] %s1618_s9 }
  0x36   : > { %s1620_s10 = scalar_lea.vmem %s1619_s9, 1024  ;;  %p1621_p9 = scmp.lt.s32.totalorder %s1820_s22, %s1619_s9 }
  0x37   : > { %p1616_p6 = pnand %p1614_p1, %p1602_p7  ;;  %p1622_p3 = scmp.lt.s32.totalorder %s1620_s10, %s1613_s5 }
  0x39   : > { %p1617_p5 = pneg %p1616_p6  ;;  %p1623_p4 = por %p1622_p3, %p1621_p9 }
  0x3b   : > { %p1624_p8 = pnand %p1623_p4, %p1617_p5 }
  0x3d   : > { %1627 = shalt.err (!%p1624_p8)
}
  0x3e   : > { %s1702_s11 = smov 256   ;;  %s1703_s12 = smov 16  }
  0x3f   : > { %1526 = dma.hbm_to_vmem [thread:$0]  (!%p1816_p11), %s1814_s13, 512, %s1820_s22, %s1822_s24, %s1702_s11, %s1702_s11, %s1703_s12  }
  0x40   : > { %p2633_p1 = scmp.ne.s32.totalorder %s2628_s21, 0 }
  0x42   : > { %173 = sbr.rel (%p2633_p1) target bundleno = 417 (0x1a1), region = 32 }
  0x47   : > { %s1846_s18 = sand.u32 1, %s1688_s15   ;;  %p2634_p4 = scmp.ne.s32.totalorder %s2626_s19, 0 }
  0x48   : > { %s1272_s26 = sshll.u32 %s1846_s18, 5  ;;  %s176_s27 = scalar_lea.sflag [#allocation4], %s1846_s18 }
  0x49   : > { %s1850_s28 = scalar_lea.vmem [#allocation3], %s1272_s26 }
  0x4a   : > { %1671 = dma.done.wait (%p2634_p4), %s176_s27, 512  }
  0x4b   : > { %1673 = vsyncadd (%p2634_p4), %s176_s27, 4294966784  ;;  %p2635_p6 = scmp.eq.s32.totalorder %s1751_s2, 0 }
  0x4d   : > { %1675 = dma.done.wait (%p2635_p6), [#allocation7], 4096   ;;  %p2636_p8 = pmov %p2635_p6 }
  0x4e   : > { %v243_v0 = vld [vmem:[#allocation6 + $0xf8] sm:$0xff]  ;;  %v242_v2 = vld [vmem:[#allocation6 + $0xf0] sm:$0xff]  ;;  %v241_v7 = vld [vmem:[#allocation6 + $0xe8] sm:$0xff]  ;;  %s244_s19 = sld [smem:[#allocation2]]  ;;  %s1274_s21 = sshll.u32 %s1846_s18, 4 }
  0x4f   : > { %1677 = vsyncadd (%p2636_p8), [#allocation7], 4294963200  ;;  %v227_v1 = vld [vmem:[#allocation6 + $0x78] sm:$0xff]  ;;  %v1860_v3 = vand.u32 4294901760, %v243_v0  ;;  %v1864_v5 = vand.u32 4294901760, %v242_v2  ;;  %v226_v6 = vld [vmem:[#allocation6 + $0x70] sm:$0xff] }
  0x50   : > { %v1862_v4 = vand.u32 4294901760, %v227_v1  ;;  %v225_v8 = vld [vmem:[#allocation6 + $0x68] sm:$0xff]  ;;  %v1866_v9 = vand.u32 4294901760, %v226_v6  ;;  %v1868_v10 = vand.u32 4294901760, %v241_v7  ;;  %v240_v12 = vld [vmem:[#allocation6 + $0xe0] sm:$0xff]  ;;  %v239_v14 = vld [vmem:[#allocation6 + $0xd8] sm:$0xff] }
  0x51   : > { %v1870_v11 = vand.u32 4294901760, %v225_v8  ;;  %v224_v13 = vld [vmem:[#allocation6 + $0x60] sm:$0xff]  ;;  %1283 = vmatprep.subr.mxu0 %v1860_v3  ;;  %v1873_v15 = vand.u32 4294901760, %v240_v12  ;;  %v1877_v17 = vand.u32 4294901760, %v239_v14  ;;  %v1880_v18 = vsub.f32 %v243_v0, %v1860_v3  ;;  %v1882_v19 = vld [vmem:[#allocation6 + $0x58] sm:$0xff]  ;;  %v1884_v20 = vld [vmem:[#allocation6 + $0xd0] sm:$0xff] }
  0x52   : > { %v1875_v16 = vand.u32 4294901760, %v224_v13  ;;  %v1886_v21 = vld [vmem:[#allocation6 + $0x50] sm:$0xff]  ;;  %1284 = vmatpush3.msra.mxu0 %v1862_v4  ;;  %v1890_v22 = vand.u32 4294901760, %v1882_v19  ;;  %v1893_v23 = vsub.f32 %v227_v1, %v1862_v4  ;;  %v1896_v24 = vand.u32 4294901760, %v1884_v20  ;;  %v1901_v26 = vld [vmem:[#allocation6 + $0xc8] sm:$0xff]  ;;  %v1905_v28 = vld [vmem:[#allocation6 + $0xc0] sm:$0xff] }
  0x53   : > { %v1899_v25 = vsub.f32 %v242_v2, %v1864_v5  ;;  %v1903_v27 = vld [vmem:[#allocation6 + $0x48] sm:$0xff]  ;;  %1285 = vmatprep.subr.mxu0 %v1864_v5  ;;  %v2567_v29 = vand.u32 4294901760, %v1880_v18  ;;  %v1910_v30 = vand.u32 4294901760, %v1886_v21  ;;  %v1913_v31 = vsub.f32 %v226_v6, %v1866_v9  ;;  %v1927_v37 = vld [vmem:[#allocation6 + $0x40] sm:$0xff]  ;;  %v1951_v46 = vld [vmem:[#allocation6 + $0xb8] sm:$0xff]  ;;  %s205_s13 = scalar_lea.vmem [#allocation8], %s1274_s21 }
  0x54   : > { %2637 = vst [vmem:[#allocation12_spill] sm:$0xff] %v1896_v24  ;;  %v1916_v32 = vand.u32 4294901760, %v1901_v26  ;;  %1286 = vmatpush3.msra.mxu0 %v1866_v9  ;;  %v2565_v33 = vand.u32 4294901760, %v1893_v23  ;;  %v1922_v35 = vsub.f32 %v241_v7, %v1868_v10  ;;  %v1925_v36 = vand.u32 4294901760, %v1903_v27  ;;  %v1961_v51 = vld [vmem:[#allocation6 + $0x38] sm:$0xff]  ;;  %v1968_v56 = vld [vmem:[#allocation6 + $0xb0] sm:$0xff] }
  0x55   : > { %2638 = vst [vmem:[#allocation13_spill] sm:$0xff] %v1910_v30  ;;  %v2564_v34 = vand.u32 4294901760, %v1899_v25  ;;  %1287 = vmatprep.subr.mxu0 %v1868_v10  ;;  %v489_v38 = vsub.f32 %v1880_v18, %v2567_v29  ;;  %v2562_v39 = vand.u32 4294901760, %v1913_v31  ;;  %v1935_v40 = vsub.f32 %v225_v8, %v1870_v11  ;;  %v1980_v61 = vld [vmem:[#allocation6 + $0x30] sm:$0xff]  ;;  %v1992_v2 = vld [vmem:[#allocation6 + $0xa8] sm:$0xff]  ;;  %s1180_s22 = sshll.u32 %s205_s13, 4  ;;  %s2498_s22 = int_to_ptr.vmem [resolvable:$true] %s1180_s22 }
  0x56   : > { %2639 = vst [vmem:[#allocation14_spill] sm:$0xff] %v1916_v32  ;;  %2640 = vst [vmem:[#allocation15_spill] sm:$0xff] %v1925_v36  ;;  %v1938_v41 = vand.u32 4294901760, %v1905_v28  ;;  %1288 = vmatpush3.msra.mxu0 %v1870_v11  ;;  %v377_v42 = vsub.f32 %v1893_v23, %v2565_v33  ;;  %v2560_v44 = vand.u32 4294901760, %v1922_v35  ;;  %v1949_v45 = vsub.f32 %v240_v12, %v1873_v15  ;;  %s1282_s23 = sshll.u32 %s1751_s2, 8  ;;  %s1167_s4 = scalar_lea.sflag [#allocation5], %s1846_s18 }
  0x57   : > { %v496_v43 = vsub.f32 %v1899_v25, %v2564_v34  ;;  %1289 = vmatprep.subr.mxu0 %v1873_v15  ;;  %v490_v47 = vand.u32 4294901760, %v489_v38  ;;  %v384_v48 = vsub.f32 %v1913_v31, %v2562_v39  ;;  %v2559_v49 = vand.u32 4294901760, %v1935_v40  ;;  %v2083_v39 = vld [vmem:[#allocation6 + $0x90] sm:$0xff]  ;;  %s2503_s30 = scalar_lea.hbm %s2549_s3, %s1282_s23  ;;  %s1628_s5 = scalar_lea.vmem %s2498_s22, 256 }
  0x58   : > { %2641 = vst [vmem:[#allocation16_spill] sm:$0xff] %v1938_v41  ;;  %v1959_v50 = vand.u32 4294901760, %v1927_v37  ;;  %1290 = vmatpush3.msra.mxu0 %v1875_v16  ;;  %v378_v52 = vand.u32 4294901760, %v377_v42  ;;  %v503_v54 = vsub.f32 %v1922_v35, %v2560_v44  ;;  %v2557_v55 = vand.u32 4294901760, %v1949_v45  ;;  %v2093_v34 = vld [vmem:[#allocation6 + $0x10] sm:$0xff]  ;;  %p1629_p3 = scmp.ne.s32.totalorder %s2498_s22, %s1628_s5  ;;  %p2738_p11 = scmp.ne.s32.totalorder %s2631_s7, 0 }
  0x59   : > { %v497_v53 = vand.u32 4294901760, %v496_v43  ;;  %1291 = vmatprep.subr.mxu0 %v1877_v17  ;;  %1321 = vmatprep.subr.mxu1 %v490_v47  ;;  %v385_v57 = vand.u32 4294901760, %v384_v48  ;;  %v391_v58 = vsub.f32 %v1935_v40, %v2559_v49  ;;  %v1975_v59 = vsub.f32 %v224_v13, %v1875_v16  ;;  %v2003_v13 = vld [vmem:[#allocation6 + $0x28] sm:$0xff]  ;;  %v2070_v49 = vld [vmem:[#allocation6 + $0x18] sm:$0xff]  ;;  %s1704_s2 = smov [#allocation8]  }
  0x5a   : > { %2642 = vst [vmem:[#allocation17_spill] sm:$0xff] %v1959_v50  ;;  %v1978_v60 = vand.u32 4294901760, %v1951_v46  ;;  %1292 = vmatpush3.msra.mxu0 %v1890_v22  ;;  %1322 = vmatpush3.msra.mxu1 %v378_v52  ;;  %v504_v62 = vand.u32 4294901760, %v503_v54  ;;  %v510_v63 = vsub.f32 %v1949_v45, %v2557_v55  ;;  %v1987_v0 = vsub.f32 %v239_v14, %v1877_v17  ;;  %p1630_p7 = pnand %p1629_p3, %p2738_p11  ;;  %s1632_s8 = sshll.u32 %s1704_s2, 4  ;;  %s1633_s8 = int_to_ptr.vmem [resolvable:$false] %s1632_s8 }
  0x5b   : > { %v1990_v1 = vand.u32 4294901760, %v1961_v51  ;;  %1293 = vmatprep.subr.mxu0 %v1896_v24  ;;  %1323 = vmatprep.subr.mxu1 %v497_v53  ;;  %v392_v6 = vand.u32 4294901760, %v391_v58  ;;  %v2555_v7 = vand.u32 4294901760, %v1975_v59  ;;  %v1998_v8 = vsub.f32 %v1882_v19, %v1890_v22  ;;  %s1634_s9 = scalar_lea.vmem %s1633_s8, 512  ;;  %p1635_p10 = scmp.lt.s32.totalorder %s2498_s22, %s1633_s8 }
  0x5c   : > { %2643 = vst [vmem:[#allocation18_spill] sm:$0xff] %v1978_v60  ;;  %v2001_v12 = vand.u32 4294901760, %v1968_v56  ;;  %1294 = vmatpush3.msra.mxu0 %v1910_v30  ;;  %1324 = vmatpush3.msra.mxu1 %v385_v57  ;;  %v511_v14 = vand.u32 4294901760, %v510_v63  ;;  %v2554_v38 = vand.u32 4294901760, %v1987_v0  ;;  %v2009_v42 = vsub.f32 %v1884_v20, %v1896_v24  ;;  %v2026_v20 = vld [vmem:[#allocation6 + $0xa0] sm:$0xff]  ;;  %p1631_p12 = pneg %p1630_p7  ;;  %p1636_p2 = scmp.lt.s32.totalorder %s1634_s9, %s1628_s5 }
  0x5d   : > { %2644 = vst [vmem:[#allocation19_spill] sm:$0xff] %v1990_v1  ;;  %v2012_v43 = vand.u32 4294901760, %v1980_v61  ;;  %1295 = vmatprep.subr.mxu0 %v1916_v32  ;;  %1325 = vmatprep.subr.mxu1 %v504_v62  ;;  %v398_v19 = vsub.f32 %v1975_v59, %v2555_v7  ;;  %v2556_v47 = vand.u32 4294901760, %v1998_v8  ;;  %v2021_v48 = vsub.f32 %v1886_v21, %v1910_v30 }
  0x5e   : > { %2645 = vst [vmem:[#allocation20_spill] sm:$0xff] %v2001_v12  ;;  %v2024_v52 = vand.u32 4294901760, %v1992_v2  ;;  %1296 = vmatpush3.msra.mxu0 %v1925_v36  ;;  %1326 = vmatpush3.msra.mxu1 %v392_v6  ;;  %v517_v53 = vsub.f32 %v1987_v0, %v2554_v38  ;;  %v2558_v54 = vand.u32 4294901760, %v2009_v42  ;;  %v2035_v57 = vsub.f32 %v1901_v26, %v1916_v32  ;;  %v2049_v38 = vld [vmem:[#allocation6 + $0x20] sm:$0xff]  ;;  %p1637_p13 = por %p1636_p2, %p1635_p10 }
  0x5f   : > { %2646 = vst [vmem:[#allocation21_spill] sm:$0xff] %v2012_v43  ;;  %v2038_v21 = vand.u32 4294901760, %v2003_v13  ;;  %1297 = vmatprep.subr.mxu0 %v1938_v41  ;;  %1327 = vmatprep.subr.mxu1 %v511_v14  ;;  %v399_v58 = vand.u32 4294901760, %v398_v19  ;;  %v405_v62 = vsub.f32 %v1998_v8, %v2556_v47  ;;  %v2561_v63 = vand.u32 4294901760, %v2021_v48  ;;  %v2059_v47 = vld [vmem:[#allocation6 + $0x98] sm:$0xff] }
  0x60   : > { %2647 = vst [vmem:[#allocation22_spill] sm:$0xff] %v2024_v52  ;;  %v2047_v6 = vsub.f32 %v1903_v27, %v1925_v36  ;;  %1298 = vmatpush3.msra.mxu0 %v1959_v50  ;;  %v518_v26 = vand.u32 4294901760, %v517_v53  ;;  %v524_v14 = vsub.f32 %v2009_v42, %v2558_v54  ;;  %v2563_v19 = vand.u32 4294901760, %v2035_v57  ;;  %v209_v36 = vld [vmem:[%s1850_s28 + $0x8] sm:$0xff]  ;;  %p1638_p0 = pnand %p1637_p13, %p1631_p12 }
  0x61   : > { %2648 = vst [vmem:[#allocation23_spill] sm:$0xff] %v2038_v21  ;;  %v2057_v7 = vand.u32 4294901760, %v2026_v20  ;;  %1328 = vmatpush3.msra.mxu1 %v399_v58  ;;  %1299 = vmatprep.subr.mxu0 %v1978_v60  ;;  %v406_v27 = vand.u32 4294901760, %v405_v62  ;;  %v412_v55 = vsub.f32 %v2021_v48, %v2561_v63  ;;  %v2068_v54 = vsub.f32 %v1905_v28, %v1938_v41 }
  0x62   : > { %v2566_v53 = vand.u32 4294901760, %v2047_v6  ;;  %1329 = vmatprep.subr.mxu1 %v518_v26  ;;  %1300 = vmatpush3.msra.mxu0 %v1990_v1  ;;  %v525_v44 = vand.u32 4294901760, %v524_v14  ;;  %v531_v58 = vsub.f32 %v2035_v57, %v2563_v19  ;;  %v2077_v62 = vand.u32 4294901760, %v2049_v38 }
  0x63   : > { %2649 = vst [vmem:[#allocation24_spill] sm:$0xff] %v2057_v7  ;;  %v2081_v63 = vsub.f32 %v1927_v37, %v1959_v50  ;;  %1330 = vmatpush3.msra.mxu1 %v406_v27  ;;  %1301 = vmatprep.subr.mxu0 %v2001_v12  ;;  %v413_v28 = vand.u32 4294901760, %v412_v55  ;;  %v2570_v14 = vand.u32 4294901760, %v2068_v54  ;;  %v2091_v19 = vand.u32 4294901760, %v2059_v47 }
  0x64   : > { %2650 = vst [vmem:[#allocation25_spill] sm:$0xff] %v2077_v62  ;;  %v419_v26 = vsub.f32 %v2047_v6, %v2566_v53  ;;  %1331 = vmatprep.subr.mxu1 %v525_v44  ;;  %1302 = vmatpush3.msra.mxu0 %v2012_v43  ;;  %v532_v37 = vand.u32 4294901760, %v531_v58  ;;  %v2099_v55 = vsub.f32 %v1951_v46, %v1978_v60  ;;  %v2102_v33 = vand.u32 4294901760, %v2070_v49  ;;  %v2104_v53 = vld [vmem:[#allocation6 + $0x88] sm:$0xff] }
  0x65   : > { %2651 = vst [vmem:[#allocation26_spill] sm:$0xff] %v2091_v19  ;;  %v2573_v27 = vand.u32 4294901760, %v2081_v63  ;;  %1332 = vmatpush3.msra.mxu1 %v413_v28  ;;  %1303 = vmatprep.subr.mxu0 %v2024_v52  ;;  %v538_v44 = vsub.f32 %v2068_v54, %v2570_v14  ;;  %v2112_v58 = vsub.f32 %v1961_v51, %v1990_v1  ;;  %v2115_v46 = vand.u32 4294901760, %v2083_v39  ;;  %v2129_v51 = vld [vmem:[#allocation6 + $0x8] sm:$0xff] }
  0x66   : > { %2652 = vst [vmem:[#allocation27_spill] sm:$0xff] %v2102_v33  ;;  %v420_v29 = vand.u32 4294901760, %v419_v26  ;;  %1333 = vmatprep.subr.mxu1 %v532_v37  ;;  %1304 = vmatpush3.msra.mxu0 %v2038_v21  ;;  %v2124_v60 = vsub.f32 %v1968_v56, %v2001_v12  ;;  %v2127_v14 = vand.u32 4294901760, %v2093_v34  ;;  %v2138_v26 = vand.u32 4294901760, %v2104_v53  ;;  %v2140_v56 = vld [vmem:[#allocation6 + $0x80] sm:$0xff] }
  0x67   : > { %2653 = vst [vmem:[#allocation28_spill] sm:$0xff] %v2115_v46  ;;  %v426_v28 = vsub.f32 %v2081_v63, %v2573_v27  ;;  %1305 = vmatprep.subr.mxu0 %v2057_v7  ;;  %v539_v37 = vand.u32 4294901760, %v538_v44  ;;  %v2135_v27 = vsub.f32 %v1980_v61, %v2012_v43  ;;  %v2656_v50 = vand.u32 4294901760, %v2099_v55  ;;  %v2163_v44 = vld [vmem:[#allocation6] sm:$0xff] }
  0x68   : > { %2654 = vst [vmem:[#allocation29_spill] sm:$0xff] %v2127_v14  ;;  %1334 = vmatpush3.msra.mxu1 %v420_v29  ;;  %2655 = vst [vmem:[#allocation30_spill] sm:$0xff] %v2138_v26  ;;  %1306 = vmatpush3.msra.mxu0 %v2077_v62  ;;  %v2149_v1 = vsub.f32 %v1992_v2, %v2024_v52  ;;  %v2658_v61 = vand.u32 4294901760, %v2112_v58  ;;  %v2157_v41 = vand.u32 4294901760, %v2129_v51  ;;  %v2171_v52 = vand.u32 4294901760, %v2140_v56 }
  0x69   : > { %v427_v12 = vand.u32 4294901760, %v426_v28  ;;  %v545_v29 = vsub.f32 %v2099_v55, %v2656_v50  ;;  %1335 = vmatprep.subr.mxu1 %v539_v37  ;;  %1307 = vmatprep.subr.mxu0 %v2091_v19  ;;  %v2161_v50 = vsub.f32 %v2003_v13, %v2038_v21  ;;  %v2660_v37 = vand.u32 4294901760, %v2124_v60 }
  0x6a   : > { %2657 = vst [vmem:[#allocation31_spill] sm:$0xff] %v2149_v1  ;;  %v433_v43 = vsub.f32 %v2112_v58, %v2658_v61  ;;  %1308 = vmatpush3.msra.mxu0 %v2102_v33  ;;  %v2661_v13 = vand.u32 4294901760, %v2135_v27  ;;  %v2181_v21 = vsub.f32 %v2026_v20, %v2057_v7  ;;  %v2662_v30 = vand.u32 4294901760, %v2149_v1 }
  0x6b   : > { %2659 = vst [vmem:[#allocation32_spill] sm:$0xff] %v2161_v50  ;;  %1336 = vmatpush3.msra.mxu1 %v427_v12  ;;  %v546_v2 = vand.u32 4294901760, %v545_v29  ;;  %v552_v61 = vsub.f32 %v2124_v60, %v2660_v37  ;;  %1309 = vmatprep.subr.mxu0 %v2115_v46  ;;  %v208_v37 = vld [vmem:[%s1850_s28] sm:$0xff]  ;;  %v2189_v24 = vand.u32 4294901760, %v2163_v44  ;;  %v2664_v20 = vand.u32 4294901760, %v2161_v50 }
  0x6c   : > { %v434_v32 = vand.u32 4294901760, %v433_v43  ;;  %v440_v12 = vsub.f32 %v2135_v27, %v2661_v13  ;;  %1310 = vmatpush3.msra.mxu0 %v2127_v14  ;;  %v559_v43 = vsub.f32 %v2149_v1, %v2662_v30  ;;  %v2193_v13 = vsub.f32 %v2049_v38, %v2077_v62 }
  0x6d   : > { %1337 = vmatprep.subr.mxu1 %v546_v2  ;;  %v553_v28 = vand.u32 4294901760, %v552_v61  ;;  %1311 = vmatprep.subr.mxu0 %v2138_v26  ;;  %v447_v2 = vsub.f32 %v2161_v50, %v2664_v20  ;;  %v2598_v61 = vand.u32 4294901760, %v2181_v21  ;;  %v2200_v7 = vand.u32 4294901760, %v209_v36 }
  0x6e   : > { %2663 = vst [vmem:[#allocation33_spill] sm:$0xff] %v2193_v13  ;;  %1338 = vmatpush3.msra.mxu1 %v434_v32  ;;  %v441_v29 = vand.u32 4294901760, %v440_v12  ;;  %v560_v30 = vand.u32 4294901760, %v559_v43  ;;  %1312 = vmatpush3.msra.mxu0 %v2157_v41  ;;  %v2599_v1 = vand.u32 4294901760, %v2193_v13  ;;  %v2206_v32 = vsub.f32 %v2059_v47, %v2091_v19 }
  0x6f   : > { %2665 = vst [vmem:[#allocation34_spill] sm:$0xff] %v2200_v7  ;;  %1339 = vmatprep.subr.mxu1 %v553_v28  ;;  %v2208_v38 = vand.u32 4294901760, %v208_v37  ;;  %v448_v12 = vand.u32 4294901760, %v447_v2  ;;  %1313 = vmatprep.subr.mxu0 %v2171_v52  ;;  %v566_v20 = vsub.f32 %v2181_v21, %v2598_v61  ;;  %v2215_v28 = vsub.f32 %v209_v36, %v2200_v7 }
  0x70   : > { %1340 = vmatpush3.msra.mxu1 %v441_v29  ;;  %v2219_v43 = vsub.f32 %v2070_v49, %v2102_v33  ;;  %1314 = vmatpush3.msra.mxu0 %v2189_v24  ;;  %v454_v47 = vsub.f32 %v2193_v13, %v2599_v1  ;;  %v2231_v36 = vsub.f32 %v2083_v39, %v2115_v46 }
  0x71   : > { %2666 = vst [vmem:[#allocation35_spill] sm:$0xff] %v2208_v38  ;;  %1341 = vmatprep.subr.mxu1 %v560_v30  ;;  %v2227_v2 = vsub.f32 %v208_v37, %v2208_v38  ;;  %v567_v61 = vand.u32 4294901760, %v566_v20  ;;  %v2604_v49 = vand.u32 4294901760, %v2215_v28  ;;  %1359 = vmatprep.subr.mxu0 %v1880_v18  ;;  %v2238_v1 = vsub.f32 %v2093_v34, %v2127_v14 }
  0x72   : > { %2667 = vst [vmem:[#allocation36_spill] sm:$0xff] %v2219_v43  ;;  %1342 = vmatpush3.msra.mxu1 %v448_v12  ;;  %v2607_v30 = vand.u32 4294901760, %v2219_v43  ;;  %v455_v29 = vand.u32 4294901760, %v454_v47  ;;  %v2668_v37 = vand.u32 4294901760, %v2206_v32  ;;  %598 = vmatprep.mubr.f32.mxu1 %v2200_v7  ;;  %v2670_v7 = vand.u32 4294901760, %v2231_v36 }
  0x73   : > { %1343 = vmatprep.subr.mxu1 %v567_v61  ;;  %v345_v20 = vsub.f32 %v2215_v28, %v2604_v49  ;;  %v2669_v12 = vand.u32 4294901760, %v2227_v2  ;;  %v2265_v14 = vsub.f32 %v2129_v51, %v2157_v41  ;;  %v2671_v46 = vand.u32 4294901760, %v2238_v1 }
  0x74   : > { %v573_v33 = vsub.f32 %v2206_v32, %v2668_v37  ;;  %v461_v34 = vsub.f32 %v2219_v43, %v2607_v30  ;;  %v2255_v37 = vsub.f32 %v2104_v53, %v2138_v26  ;;  %1344 = vmatpush3.msra.mxu1 %v455_v29  ;;  %v580_v49 = vsub.f32 %v2231_v36, %v2670_v7 }
  0x75   : > { %v351_v61 = vsub.f32 %v2227_v2, %v2669_v12  ;;  %v346_v30 = vand.u32 4294901760, %v345_v20  ;;  %v468_v53 = vsub.f32 %v2238_v1, %v2671_v46  ;;  %v2614_v12 = vand.u32 4294901760, %v2265_v14 }
  0x76   : > { %v574_v39 = vand.u32 4294901760, %v573_v33  ;;  %v462_v47 = vand.u32 4294901760, %v461_v34  ;;  %v2615_v33 = vand.u32 4294901760, %v2255_v37  ;;  %v581_v26 = vand.u32 4294901760, %v580_v49 }
  0x77   : > { %v352_v29 = vand.u32 4294901760, %v351_v61  ;;  %v2274_v7 = vsub.f32 %v2140_v56, %v2171_v52  ;;  %347 = vmatprep.mubr.f32.mxu0 %v346_v30  ;;  %v469_v51 = vand.u32 4294901760, %v468_v53  ;;  %v2281_v46 = vsub.f32 %v2163_v44, %v2189_v24  ;;  %v211_v61 = vld [vmem:[%s1850_s28 + $0x18] sm:$0xff] }
  0x78   : > { %1345 = vmatprep.subr.mxu1 %v574_v39  ;;  %v587_v20 = vsub.f32 %v2255_v37, %v2615_v33  ;;  %v475_v49 = vsub.f32 %v2265_v14, %v2614_v12  ;;  %v2678_v12 = vld [vmem:[#allocation16_spill] sm:$0xff] }
  0x79   : > { %1346 = vmatpush3.msra.mxu1 %v462_v47  ;;  %2672 = vst [vmem:[#allocation37_spill] sm:$0xff] %v2281_v46  ;;  %353 = vmatmul.mubr.f32.vlgmr.msra.gmra.mxu0 %v352_v29  ;;  %v2613_v56 = vand.u32 4294901760, %v2274_v7  ;;  %v2612_v39 = vand.u32 4294901760, %v2281_v46  ;;  %v210_v29 = vld [vmem:[%s1850_s28 + $0x10] sm:$0xff] }
  0x7a   : > { %1347 = vmatprep.subr.mxu1 %v581_v26  ;;  %1360 = vmatpush3.msra.mxu0 %v1893_v23  ;;  %v588_v30 = vand.u32 4294901760, %v587_v20  ;;  %v476_v44 = vand.u32 4294901760, %v475_v49  ;;  %v2309_v20 = vand.u32 4294901760, %v210_v29 }
  0x7b   : > { %1348 = vmatpush3.msra.mxu1 %v469_v51  ;;  %1361 = vmatprep.subr.mxu0 %v1899_v25  ;;  %v594_v26 = vsub.f32 %v2274_v7, %v2613_v56  ;;  %v482_v34 = vsub.f32 %v2281_v46, %v2612_v39  ;;  %v2303_v51 = vand.u32 4294901760, %v211_v61  ;;  %v2677_v56 = vld [vmem:[#allocation15_spill] sm:$0xff] }
  0x7c   : > { %1362 = vmatpush3.msra.mxu0 %v1913_v31  ;;  %1349 = vmatprep.subr.mxu1 %v588_v30  ;;  %v2323_v30 = vsub.f32 %v210_v29, %v2309_v20  ;;  %v2676_v29 = vld [vmem:[#allocation14_spill] sm:$0xff] }
  0x7d   : > { %1363 = vmatprep.subr.mxu0 %v1922_v35  ;;  %1350 = vmatpush3.msra.mxu1 %v476_v44  ;;  %v595_v47 = vand.u32 4294901760, %v594_v26  ;;  %v483_v53 = vand.u32 4294901760, %v482_v34  ;;  %v2316_v49 = vsub.f32 %v211_v61, %v2303_v51  ;;  %v2673_v34 = vld [vmem:[#allocation12_spill] sm:$0xff]  ;;  %v2674_v61 = vld [vmem:[#allocation13_spill] sm:$0xff] }
  0x7e   : > { %1364 = vmatpush3.msra.mxu0 %v1935_v40  ;;  %v2620_v26 = vand.u32 4294901760, %v2323_v30 }
  0x7f   : > { %1351 = vmatprep.subr.mxu1 %v595_v47  ;;  %1365 = vmatprep.subr.mxu0 %v1949_v45  ;;  %v2616_v44 = vand.u32 4294901760, %v2316_v49 }
  0x80   : > { %1352 = vmatpush3.msra.mxu1 %v483_v53  ;;  %1366 = vmatpush3.msra.mxu0 %v1975_v59  ;;  %v2675_v53 = vld [vmem:[#allocation31_spill] sm:$0xff]  ;;  %v366_v39 = vsub.f32 %v2323_v30, %v2620_v26  ;;  %v2682_v26 = vld [vmem:[#allocation20_spill] sm:$0xff] }
  0x81   : > { %600 = vmatmul.mubr.f32.vlgmr.msra.gmra.mxu1 %v2208_v38  ;;  %1367 = vmatprep.subr.mxu0 %v1987_v0  ;;  %v360_v47 = vsub.f32 %v2316_v49, %v2616_v44  ;;  %v2679_v44 = vld [vmem:[#allocation17_spill] sm:$0xff]  ;;  %v2680_v38 = vld [vmem:[#allocation18_spill] sm:$0xff] }
  0x82   : > { %1397 = vmatprep.subr.mxu1 %v1860_v3  ;;  %1368 = vmatpush3.msra.mxu0 %v1998_v8 }
  0x83   : > { %1398 = vmatpush3.msra.mxu1 %v1862_v4  ;;  %1369 = vmatprep.subr.mxu0 %v2009_v42  ;;  %v361_v33 = vand.u32 4294901760, %v360_v47  ;;  %v2684_v47 = vld [vmem:[#allocation22_spill] sm:$0xff] }
  0x84   : > { %1399 = vmatprep.subr.mxu1 %v1864_v5  ;;  %1370 = vmatpush3.msra.mxu0 %v2021_v48 }
  0x85   : > { %1400 = vmatpush3.msra.mxu1 %v1866_v9  ;;  %1371 = vmatprep.subr.mxu0 %v2035_v57 }
  0x86   : > { %1401 = vmatprep.subr.mxu1 %v1868_v10  ;;  %1372 = vmatpush3.msra.mxu0 %v2047_v6 }
  0x87   : > { %1402 = vmatpush3.msra.mxu1 %v1870_v11  ;;  %1373 = vmatprep.subr.mxu0 %v2068_v54 }
  0x88   : > { %1403 = vmatprep.subr.mxu1 %v1873_v15  ;;  %1374 = vmatpush3.msra.mxu0 %v2081_v63 }
  0x89   : > { %1404 = vmatpush3.msra.mxu1 %v1875_v16  ;;  %1375 = vmatprep.subr.mxu0 %v2099_v55 }
  0x8a   : > { %1405 = vmatprep.subr.mxu1 %v1877_v17  ;;  %1376 = vmatpush3.msra.mxu0 %v2112_v58 }
  0x8b   : > { %1406 = vmatpush3.msra.mxu1 %v1890_v22  ;;  %1377 = vmatprep.subr.mxu0 %v2124_v60 }
  0x8c   : > { %1407 = vmatprep.subr.mxu1 %v2673_v34  ;;  %1378 = vmatpush3.msra.mxu0 %v2135_v27 }
  0x8d   : > { %1408 = vmatpush3.msra.mxu1 %v2674_v61  ;;  %1379 = vmatprep.subr.mxu0 %v2675_v53 }
  0x8e   : > { %1409 = vmatprep.subr.mxu1 %v2676_v29  ;;  %1380 = vmatpush3.msra.mxu0 %v2161_v50  ;;  %v367_v50 = vand.u32 4294901760, %v366_v39  ;;  %v2681_v29 = vld [vmem:[#allocation19_spill] sm:$0xff]  ;;  %v2686_v39 = vld [vmem:[#allocation24_spill] sm:$0xff] }
  0x8f   : > { %1410 = vmatpush3.msra.mxu1 %v2677_v56  ;;  %1381 = vmatprep.subr.mxu0 %v2181_v21 }
  0x90   : > { %1411 = vmatprep.subr.mxu1 %v2678_v12  ;;  %1382 = vmatpush3.msra.mxu0 %v2193_v13  ;;  %v2683_v13 = vld [vmem:[#allocation21_spill] sm:$0xff] }
  0x91   : > { %1412 = vmatpush3.msra.mxu1 %v2679_v44  ;;  %1383 = vmatprep.subr.mxu0 %v2206_v32 }
  0x92   : > { %1413 = vmatprep.subr.mxu1 %v2680_v38  ;;  %1384 = vmatpush3.msra.mxu0 %v2219_v43  ;;  %v2685_v43 = vld [vmem:[#allocation23_spill] sm:$0xff] }
  0x93   : > { %1414 = vmatpush3.msra.mxu1 %v2681_v29  ;;  %1385 = vmatprep.subr.mxu0 %v2231_v36 }
  0x94   : > { %1415 = vmatprep.subr.mxu1 %v2682_v26  ;;  %362 = vmatprep.mubr.f32.mxu0 %v361_v33  ;;  %v2688_v33 = vld [vmem:[#allocation27_spill] sm:$0xff] }
  0x95   : > { %1386 = vmatpush3.msra.mxu0 %v2238_v1  ;;  %1416 = vmatpush3.msra.mxu1 %v2683_v13 }
  0x96   : > { %368 = vmatmul.mubr.f32.gmra.mxu0 %v367_v50  ;;  %1387 = vmatprep.subr.mxu0 %v2255_v37  ;;  %v2687_v50 = vand.u32 4294901760, %v1880_v18  ;;  %v2694_v18 = vld [vmem:[#allocation30_spill] sm:$0xff] }
  0x97   : > { %1417 = vmatprep.subr.mxu1 %v2684_v47  ;;  %1388 = vmatpush3.msra.mxu0 %v2265_v14 }
  0x98   : > { %1418 = vmatpush3.msra.mxu1 %v2685_v43  ;;  %1389 = vmatprep.subr.mxu0 %v2274_v7  ;;  %v2689_v43 = vand.u32 4294901760, %v1893_v23  ;;  %v2695_v23 = vand.u32 4294901760, %v1922_v35  ;;  %v2699_v35 = vand.u32 4294901760, %v1975_v59  ;;  %v2704_v59 = vand.u32 4294901760, %v2316_v49 }
  0x99   : > { %1419 = vmatprep.subr.mxu1 %v2686_v39  ;;  %1390 = vmatpush3.msra.mxu0 %v2281_v46  ;;  %v2690_v39 = vld [vmem:[#allocation28_spill] sm:$0xff]  ;;  %v2691_v46 = vand.u32 4294901760, %v1899_v25  ;;  %v2696_v25 = vand.u32 4294901760, %v1935_v40  ;;  %v2702_v40 = vand.u32 4294901760, %v1998_v8  ;;  %v2711_v8 = vand.u32 4294901760, %v2099_v55 }
  0x9a   : > { %742 = vmatprep.mubr.f32.mxu0 %v2215_v28  ;;  %1420 = vmatpush3.msra.mxu1 %v2077_v62  ;;  %v2692_v62 = vand.u32 4294901760, %v1913_v31  ;;  %v2697_v31 = vand.u32 4294901760, %v1949_v45  ;;  %v2703_v45 = vand.u32 4294901760, %v2009_v42  ;;  %v2716_v42 = vld [vmem:[#allocation14_spill] sm:$0xff]  ;;  %v2727_v55 = vand.u32 4294901760, %v2255_v37  ;;  %v2736_v37 = vld [vmem:[#allocation35_spill] sm:$0xff] }
  0x9b   : > { %745 = vmatmul.mubr.f32.vlgmr.msra.gmra.mxu0 %v2227_v2  ;;  %1421 = vmatprep.subr.mxu1 %v2091_v19  ;;  %v2693_v19 = vld [vmem:[#allocation29_spill] sm:$0xff] }
  0x9c   : > { %1435 = vmatprep.subr.mxu0 %v2687_v50  ;;  %1422 = vmatpush3.msra.mxu1 %v2688_v33 }
  0x9d   : > { %1436 = vmatpush3.msra.mxu0 %v2689_v43  ;;  %605 = vmatprep.mubr.f32.mxu1 %v2303_v51  ;;  %v2700_v43 = vand.u32 4294901760, %v2227_v2  ;;  %v2731_v2 = vld [vmem:[#allocation24_spill] sm:$0xff] }
  0x9e   : > { %1423 = vmatprep.subr.mxu1 %v2690_v39  ;;  %1437 = vmatprep.subr.mxu0 %v2691_v46  ;;  %v2701_v46 = vand.u32 4294901760, %v1987_v0  ;;  %v2707_v0 = vand.u32 4294901760, %v2035_v57  ;;  %v2722_v57 = vand.u32 4294901760, %v2206_v32  ;;  %v2729_v32 = vld [vmem:[#allocation23_spill] sm:$0xff] }
  0x9f   : > { %607 = vmatmul.mubr.f32.gmra.mxu1 %v2309_v20  ;;  %1438 = vmatpush3.msra.mxu0 %v2692_v62  ;;  %v2698_v62 = vand.u32 4294901760, %v2215_v28  ;;  %v2705_v28 = vand.u32 4294901760, %v2021_v48 }
  0xa0   : > { %1424 = vmatpush3.msra.mxu1 %v2693_v19  ;;  %751 = vmatprep.mubr.f32.mxu0 %v2316_v49 }
  0xa1   : > { %1425 = vmatprep.subr.mxu1 %v2694_v18  ;;  %1439 = vmatprep.subr.mxu0 %v2695_v23 }
  0xa2   : > { %754 = vmatmul.mubr.f32.gmra.mxu0 %v2323_v30  ;;  %1426 = vmatpush3.msra.mxu1 %v2157_v41 }
  0xa3   : > { %1440 = vmatpush3.msra.mxu0 %v2696_v25  ;;  %1427 = vmatprep.subr.mxu1 %v2171_v52 }
  0xa4   : > { %1441 = vmatprep.subr.mxu0 %v2697_v31  ;;  %1428 = vmatpush3.msra.mxu1 %v2189_v24 }
  0xa5   : > { %858 = vmatprep.mubr.f32.mxu1 %v2698_v62  ;;  %1442 = vmatpush3.msra.mxu0 %v2699_v35 }
  0xa6   : > { %862 = vmatmul.mubr.f32.vlgmr.msra.gmra.mxu1 %v2700_v43  ;;  %1443 = vmatprep.subr.mxu0 %v2701_v46 }
  0xa7   : > { %1473 = vmatprep.subr.mxu1 %v1860_v3  ;;  %1444 = vmatpush3.msra.mxu0 %v2702_v40  ;;  %v2706_v3 = vand.u32 4294901760, %v2323_v30 }
  0xa8   : > { %1474 = vmatpush3.msra.mxu1 %v1862_v4  ;;  %1445 = vmatprep.subr.mxu0 %v2703_v45  ;;  %v2708_v4 = vand.u32 4294901760, %v2047_v6 }
  0xa9   : > { %1475 = vmatprep.subr.mxu1 %v1864_v5  ;;  %869 = vmatprep.mubr.f32.mxu1 %v2704_v59  ;;  %v2709_v5 = vand.u32 4294901760, %v2068_v54 }
  0xaa   : > { %1446 = vmatpush3.msra.mxu0 %v2705_v28  ;;  %1476 = vmatpush3.msra.mxu1 %v1866_v9  ;;  %v2710_v9 = vand.u32 4294901760, %v2081_v63  ;;  %v2723_v63 = vld [vmem:[#allocation36_spill] sm:$0xff] }
  0xab   : > { %873 = vmatmul.mubr.f32.gmra.mxu1 %v2706_v3  ;;  %1447 = vmatprep.subr.mxu0 %v2707_v0  ;;  %v2724_v6 = vand.u32 4294901760, %v2723_v63 }
  0xac   : > { %1477 = vmatprep.subr.mxu1 %v1868_v10  ;;  %1448 = vmatpush3.msra.mxu0 %v2708_v4  ;;  %v2712_v10 = vand.u32 4294901760, %v2112_v58  ;;  %v2728_v58 = vand.u32 4294901760, %v2265_v14 }
  0xad   : > { %1478 = vmatpush3.msra.mxu1 %v1870_v11  ;;  %1449 = vmatprep.subr.mxu0 %v2709_v5  ;;  %v2713_v11 = vand.u32 4294901760, %v2124_v60  ;;  %v2720_v60 = vld [vmem:[#allocation33_spill] sm:$0xff] }
  0xae   : > { %1479 = vmatprep.subr.mxu1 %v1873_v15  ;;  %1450 = vmatpush3.msra.mxu0 %v2710_v9  ;;  %v2714_v15 = vand.u32 4294901760, %v2135_v27  ;;  %v2721_v54 = vand.u32 4294901760, %v2720_v60  ;;  %v2726_v27 = vand.u32 4294901760, %v2238_v1 }
  0xaf   : > { %1480 = vmatpush3.msra.mxu1 %v1875_v16  ;;  %1451 = vmatprep.subr.mxu0 %v2711_v8  ;;  %v2715_v16 = vand.u32 4294901760, %v2675_v53 }
  0xb0   : > { %1481 = vmatprep.subr.mxu1 %v1877_v17  ;;  %1452 = vmatpush3.msra.mxu0 %v2712_v10  ;;  %v2717_v17 = vld [vmem:[#allocation32_spill] sm:$0xff] }
  0xb1   : > { %1482 = vmatpush3.msra.mxu1 %v1890_v22  ;;  %1453 = vmatprep.subr.mxu0 %v2713_v11  ;;  %v2718_v48 = vand.u32 4294901760, %v2717_v17  ;;  %v2719_v22 = vand.u32 4294901760, %v2181_v21  ;;  %v2725_v21 = vand.u32 4294901760, %v2231_v36  ;;  %v2732_v36 = vld [vmem:[#allocation37_spill] sm:$0xff] }
  0xb2   : > { %1483 = vmatprep.subr.mxu1 %v2673_v34  ;;  %1454 = vmatpush3.msra.mxu0 %v2714_v15  ;;  %v2733_v1 = vand.u32 4294901760, %v2732_v36 }
  0xb3   : > { %1484 = vmatpush3.msra.mxu1 %v2674_v61  ;;  %1455 = vmatprep.subr.mxu0 %v2715_v16 }
  0xb4   : > { %1485 = vmatprep.subr.mxu1 %v2716_v42  ;;  %1456 = vmatpush3.msra.mxu0 %v2718_v48 }
  0xb5   : > { %1486 = vmatpush3.msra.mxu1 %v2677_v56  ;;  %1457 = vmatprep.subr.mxu0 %v2719_v22  ;;  %v2737_v56 = vld [vmem:[#allocation26_spill] sm:$0xff] }
  0xb6   : > { %1487 = vmatprep.subr.mxu1 %v2678_v12  ;;  %1458 = vmatpush3.msra.mxu0 %v2721_v54  ;;  %v2734_v12 = vld [vmem:[#allocation34_spill] sm:$0xff] }
  0xb7   : > { %1488 = vmatpush3.msra.mxu1 %v2679_v44  ;;  %1459 = vmatprep.subr.mxu0 %v2722_v57 }
  0xb8   : > { %1489 = vmatprep.subr.mxu1 %v2680_v38  ;;  %1460 = vmatpush3.msra.mxu0 %v2724_v6  ;;  %v2730_v38 = vand.u32 4294901760, %v2274_v7 }
  0xb9   : > { %1490 = vmatpush3.msra.mxu1 %v2681_v29  ;;  %1461 = vmatprep.subr.mxu0 %v2725_v21  ;;  %v245_v29 = vstv %s244_s19 }
  0xba   : > { %1491 = vmatprep.subr.mxu1 %v2682_v26  ;;  %1462 = vmatpush3.msra.mxu0 %v2726_v27 }
  0xbb   : > { %1492 = vmatpush3.msra.mxu1 %v2683_v13  ;;  %1463 = vmatprep.subr.mxu0 %v2727_v55  ;;  %v2735_v13 = vld [vmem:[#allocation25_spill] sm:$0xff] }
  0xbc   : > { %1493 = vmatprep.subr.mxu1 %v2684_v47  ;;  %1464 = vmatpush3.msra.mxu0 %v2728_v58 }
  0xbd   : > { %1494 = vmatpush3.msra.mxu1 %v2729_v32  ;;  %1465 = vmatprep.subr.mxu0 %v2730_v38 }
  0xbe   : > { %1495 = vmatprep.subr.mxu1 %v2731_v2  ;;  %1466 = vmatpush3.msra.mxu0 %v2733_v1 }
  0xbf   : > { %1039 = vmatprep.mubr.f32.mxu0 %v2734_v12  ;;  %1496 = vmatpush3.msra.mxu1 %v2735_v13 }
  0xc0   : > { %1041 = vmatmul.mubr.f32.vlgmr.msra.gmra.mxu0 %v2736_v37  ;;  %1497 = vmatprep.subr.mxu1 %v2737_v56 }
  0xc1   : > { %1498 = vmatpush3.msra.mxu1 %v2688_v33  ;;  %1046 = vmatprep.mubr.f32.mxu0 %v2303_v51 }
  0xc2   : > { %1499 = vmatprep.subr.mxu1 %v2690_v39  ;;  %1150 = vmatprep.mubr.f32.mxu1 %v2734_v12 }
  0xc3   : > { %1500 = vmatpush3.msra.mxu1 %v2693_v19 }
  0xc4   : > { %1048 = vmatmul.mubr.f32.gmra.mxu0 %v2309_v20  ;;  %1501 = vmatprep.subr.mxu1 %v2694_v18 }
  0xc5   : > { %1502 = vmatpush3.msra.mxu1 %v2157_v41 }
  0xc6   : > { %1503 = vmatprep.subr.mxu1 %v2171_v52 }
  0xc7   : > { %1504 = vmatpush3.msra.mxu1 %v2189_v24 }
  0xc8   : > { %1152 = vmatmul.mubr.f32.vlgmr.msra.gmra.mxu1 %v2736_v37 }
  0xc9   : > { %1157 = vmatprep.mubr.f32.mxu1 %v2303_v51 }
  0xcc   : > { %1159 = vmatmul.mubr.f32.gmra.mxu1 %v2309_v20 }
 0x139   : > { %v1315_v14 = vpop.f32.mrf.mxu0 }
 0x13b   : > { %v1316_v7 = vpop.f32.mrf.mxu0 }
 0x13c   : > { %v1317_v24 = vadd.f32 %v1316_v7, %v1315_v14 }
 0x13e   : > { %v355_v20 = vadd.f32 %v1317_v24, %v245_v29 }
 0x141   : > { %v1353_v19 = vpop.f32.mrf.mxu1 }
 0x143   : > { %v1354_v44 = vpop.f32.mrf.mxu1 }
 0x144   : > { %v1355_v33 = vadd.f32 %v1354_v44, %v1353_v19 }
 0x146   : > { %v602_v43 = vadd.f32 %v1355_v33, %v355_v20 }
 0x156   : > { %v1318_v49 = vpop.f32.mrf.mxu0 }
 0x158   : > { %v1319_v30 = vpop.f32.mrf.mxu0 }
 0x159   : > { %v1320_v51 = vadd.f32 %v1319_v30, %v1318_v49 }
 0x15b   : > { %v1391_v26 = vpop.f32.mrf.mxu0  ;;  %v370_v25 = vadd.f32 %v1320_v51, %v245_v29 }
 0x15d   : > { %v1392_v41 = vpop.f32.mrf.mxu0 }
 0x15e   : > { %v1393_v31 = vadd.f32 %v1392_v41, %v1391_v26 }
 0x15f   : > { %v1356_v34 = vpop.f32.mrf.mxu1 }
 0x160   : > { %v747_v45 = vadd.f32 %v1393_v31, %v602_v43 }
 0x161   : > { %v1357_v61 = vpop.f32.mrf.mxu1 }
 0x162   : > { %v1394_v52 = vpop.f32.mrf.mxu0  ;;  %v1358_v62 = vadd.f32 %v1357_v61, %v1356_v34 }
 0x164   : > { %v1395_v47 = vpop.f32.mrf.mxu0  ;;  %v609_v59 = vadd.f32 %v1358_v62, %v370_v25 }
 0x165   : > { %v1396_v28 = vadd.f32 %v1395_v47, %v1394_v52 }
 0x166   : > { %v1429_v53 = vpop.f32.mrf.mxu1 }
 0x167   : > { %v756_v10 = vadd.f32 %v1396_v28, %v609_v59 }
 0x168   : > { %v1430_v39 = vpop.f32.mrf.mxu1 }
 0x169   : > { %v1431_v46 = vadd.f32 %v1430_v39, %v1429_v53 }
 0x16b   : > { %v1432_v18 = vpop.f32.mrf.mxu1  ;;  %v864_v5 = vadd.f32 %v1431_v46, %v747_v45 }
 0x16d   : > { %v1433_v40 = vpop.f32.mrf.mxu1 }
 0x16e   : > { %v1434_v9 = vadd.f32 %v1433_v40, %v1432_v18 }
 0x170   : > { %v875_v17 = vadd.f32 %v1434_v9, %v756_v10 }
 0x180   : > { %v1467_v50 = vpop.f32.mrf.mxu0 }
 0x182   : > { %v1468_v23 = vpop.f32.mrf.mxu0 }
 0x183   : > { %v1469_v3 = vadd.f32 %v1468_v23, %v1467_v50 }
 0x184   : > { %v1470_v35 = vpop.f32.mrf.mxu0 }
 0x185   : > { %v1043_v11 = vadd.f32 %v1469_v3, %v864_v5 }
 0x186   : > { %v1471_v0 = vpop.f32.mrf.mxu0 }
 0x187   : > { %v1472_v15 = vadd.f32 %v1471_v0, %v1470_v35 }
 0x188   : > { %v1505_v4 = vpop.f32.mrf.mxu1 }
 0x189   : > { %v1050_v60 = vadd.f32 %v1472_v15, %v875_v17 }
 0x18a   : > { %v1506_v8 = vpop.f32.mrf.mxu1 }
 0x18b   : > { %v1507_v16 = vadd.f32 %v1506_v8, %v1505_v4 }
 0x18c   : > { %v1508_v42 = vpop.f32.mrf.mxu1 }
 0x18d   : > { %v1154_v48 = vadd.f32 %v1507_v16, %v1043_v11 }
 0x18e   : > { %v1509_v22 = vpop.f32.mrf.mxu1 }
 0x18f   : > { %1164 = vst [vmem:[%s205_s13] sm:$0xff] %v1154_v48  ;;  %v1510_v54 = vadd.f32 %v1509_v22, %v1508_v42 }
 0x191   : > { %v1161_v57 = vadd.f32 %v1510_v54, %v1050_v60 }
 0x193   : > { %1165 = vst [vmem:[%s205_s13 + $0x8] sm:$0xff] %v1161_v57 }
 0x194   : > { %1641 = shalt.err (!%p1638_p0)
}
 0x195   : > { %s1642_s10 = scalar_lea.hbm %s2503_s30, 256  ;;  %s1646_s26 = scalar_lea.hbm %s2549_s3, 512 }
 0x196   : > { %p1643_p5 = scmp.ne.s32.totalorder %s2503_s30, %s1642_s10  ;;  %p1647_p4 = scmp.lt.s32.totalorder %s2503_s30, %s2549_s3 }
 0x197   : > { %p1648_p6 = scmp.lt.s32.totalorder %s1646_s26, %s1642_s10 }
 0x198   : > { %p1644_p9 = pnand %p1643_p5, %p2738_p11 }
 0x199   : > { %p1649_p8 = por %p1648_p6, %p1647_p4 }
 0x19a   : > { %p1645_p1 = pneg %p1644_p9 }
 0x19c   : > { %p1650_p3 = pnand %p1649_p8, %p1645_p1 }
 0x19e   : > { %1653 = shalt.err (!%p1650_p3)
}
 0x19f   : > { %s1705_s19 = smov 128   ;;  %s1706_s21 = smov 8  }
 0x1a0   : > { %1517 = dma.vmem_to_hbm [thread:$0]  (%p2738_p11), %s2498_s22, 256, %s2503_s30, %s1167_s4, %s1705_s19, %s1705_s19, %s1706_s21  }
 0x1a1 PF: > { %s1195_s13 = sand.u32 1, %s1684_s14   ;;  %p2739_p7 = scmp.ne.s32.totalorder %s2627_s20, 0 }
 0x1a2   : > { %p2740_p12 = scmp.ge.s32.totalorder %s1696_s17, 2  ;;  %s1196_s23 = scalar_lea.sflag [#allocation5], %s1195_s13 }
 0x1a4   : > { %p1528_p10 = pnand %p2740_p12, %p2739_p7 }
 0x1a6   : > { %p1529_p2 = pneg %p1528_p10 }
 0x1a8   : > { %1679 = dma.done.wait (%p1529_p2), %s1196_s23, 256  }
 0x1a9   : > { %1681 = vsyncadd (%p1529_p2), %s1196_s23, 4294967040  ;;  %p18_p13 = scmp.ge.s32.totalorder %s1784_s25, 4   ;;  %s2741_s14 = smov %s1688_s15 }
 0x1aa   : > { %s2742_s15 = smov %s1692_s16  ;;  %s2743_s16 = smov %s1801_s6 }
 0x1ab   : > { %s2744_s17 = smov %s1784_s25  ;;  %20 = sbr.rel (!%p18_p13) target bundleno = 8 (0x8), region = 81 }
 0x1b0   :  { %1201 = vsyncpa [#allocation4], 1 }
 0x1b1   :  { %1203 = vsyncpa [#allocation4 + $0x1], 1 }
 0x1b2   :  { %1204 = vsyncpa [#allocation7], 1 }
 0x1b3   :  { %1205 = vsyncpa [#allocation5], 1 }
 0x1b4   :  { %1207 = vsyncpa [#allocation5 + $0x1], 1 }

</bundles_post_ra>
